<compile_context>
chip_gen: v6e
topology: v6e:2x2x1
jax: 0.10.0
libtpu: 0.0.40
codegen_flags: <defaults>
</compile_context>

<pallas_src>
import functools

import jax
import jax.numpy as jnp
from jax import lax
from jax.experimental import pallas as pl
from jax.experimental.pallas import tpu as pltpu


# -----------------------------------------------------------------------------
# Fused CBAM kernel: one grid step == TB batch images.
#   x_ref     : (TB, C, HWp)      input feature map f (lane-dense, HWp = padded H*W)
#   w1/b1     : (mid, C), (mid,1) ChannelAttention bottleneck layer 1
#   w2/b2     : (C, mid), (C, 1)  ChannelAttention bottleneck layer 2
#   wmask_ref : (2*KS*KS, HWp)    conv weight * boundary mask; rows [0,KS^2) = max branch,
#                                 rows [KS^2, 2KS^2) = avg branch
#   sab_ref   : SMEM (1,)         spatial conv bias
#   o_ref     : (TB, C, HWp)      output fpp
# -----------------------------------------------------------------------------
def _cbam_kernel(x_ref, w1_ref, b1_ref, w2_ref, b2_ref, wmask_ref, sab_ref, o_ref,
                 *, W, KS, HW, TB):
    HWp = x_ref.shape[2]
    KS2 = KS * KS
    x = x_ref[...].astype(jnp.float32)                      # (TB, C, HWp), f32 compute

    # ---------------- Channel attention (one batched MLP per block) ----------------
    if HWp != HW:
        # Padded lanes are zero: sum is unaffected, but max needs them masked out.
        lane = lax.broadcasted_iota(jnp.int32, (1, 1, HWp), 2)
        avg = jnp.sum(x, axis=2) * (1.0 / HW)                # (TB, C)
        mx = jnp.max(jnp.where(lane < HW, x, -jnp.inf), axis=2)
    else:
        avg = jnp.mean(x, axis=2)                            # (TB, C)
        mx = jnp.max(x, axis=2)                              # (TB, C)

    v = jnp.concatenate([avg, mx], axis=0)                   # (2TB, C): avg rows then max rows
    # w1 @ v.T  -> (mid, 2TB): single MXU pass, lane width 2*TB
    h = lax.dot_general(w1_ref[...], v, (((1,), (1,)), ((), ())),
                        preferred_element_type=jnp.float32)
    h = jnp.maximum(h + b1_ref[...], 0.0)                    # ReLU
    z = jnp.dot(w2_ref[...], h, preferred_element_type=jnp.float32) + b2_ref[...]  # (C, 2TB)
    sig = jax.nn.sigmoid(z[:, :TB] + z[:, TB:])              # (C, TB): MLP(avg)+MLP(max)
    fp = x * sig.T[:, :, None]                               # (TB, C, HWp) channel-gated

    # ---------------- Spatial attention (stacked pools, one roll per tap) ----------
    pmax = jnp.max(fp, axis=1)                               # (TB, HWp) max over channels
    pavg = jnp.mean(fp, axis=1)                              # (TB, HWp) avg over channels
    P = jnp.concatenate([pmax, pavg], axis=0)                # (2TB, HWp)

    pad = KS // 2
    att = jnp.zeros((TB, HWp), jnp.float32)
    # KSxKS "same" conv over the (H, W) grid in flattened layout: one XLU roll per tap
    # for the whole stacked block, weighted boundary masks fold the conv weights in.
    for kh in range(KS):
        for kw in range(KS):
            t = kh * KS + kw
            d = (kh - pad) * W + (kw - pad)
            s = (-d) % HWp
            r = pltpu.roll(P, shift=s, axis=1) if s else P
            att = att + (r[:TB] * wmask_ref[t:t + 1, :]
                         + r[TB:] * wmask_ref[KS2 + t:KS2 + t + 1, :])
    att = jax.nn.sigmoid(att + sab_ref[0])                   # (TB, HWp) spatial gate

    o_ref[...] = (fp * att[:, None, :]).astype(o_ref.dtype)  # fpp


def cbam_forward(params, x_nchw, *, kernel_size=3):
    B, C, H, W = x_nchw.shape
    HW = H * W
    KS = kernel_size
    pad = KS // 2
    mid = params["ca_w1"].shape[0]
    dtype = x_nchw.dtype
    itemsize = jnp.dtype(dtype).itemsize

    # Lane-dense layout: collapse (H, W) onto the lane axis (free for NCHW row-major).
    x = x_nchw.reshape(B, C, HW)

    # Keep the output store an unmasked vst: pad HW to a lane multiple (only when it's
    # large enough that the padding traffic is negligible). Masks/means use logical HW.
    if HW > 128 and HW % 128 != 0:
        HWp = ((HW + 127) // 128) * 128
        x = jnp.pad(x, ((0, 0), (0, 0), (0, HWp - HW)))
    else:
        HWp = HW

    # ---- Block-size selection: ~512 KiB input tile => ~2 MiB double-buffered in+out ----
    per_img = C * HWp * itemsize
    TB = max(1, min(B, (512 * 1024) // max(per_img, 1)))
    if B >= 2:
        TB = min(TB, max(1, B // 2))      # keep >=2 grid steps -> both v7x TCs busy
    if TB >= 8:
        TB = (TB // 8) * 8                # sublane-aligned slices inside the kernel
    G = (B + TB - 1) // TB
    B_pad = G * TB
    if B_pad != B:
        x = jnp.pad(x, ((0, B_pad - B), (0, 0), (0, 0)))

    # ---- Boundary masks with the conv weights folded in (constant-folded by XLA) ----
    hi = jnp.arange(H, dtype=jnp.int32)[:, None]
    wi = jnp.arange(W, dtype=jnp.int32)[None, :]
    rows = []
    for kh in range(KS):
        for kw in range(KS):
            dh, dw = kh - pad, kw - pad
            ok = (hi + dh >= 0) & (hi + dh < H) & (wi + dw >= 0) & (wi + dw < W)
            rows.append(ok.reshape(HW))
    masks = jnp.stack(rows, axis=0).astype(jnp.float32)        # (KS*KS, HW)
    if HWp != HW:
        masks = jnp.pad(masks, ((0, 0), (0, HWp - HW)))
    sa_w = params["sa_w"].astype(jnp.float32)                  # (1, 2, KS, KS), ch0=max ch1=avg
    wmask = jnp.concatenate([sa_w[0, 0].reshape(KS * KS, 1) * masks,
                             sa_w[0, 1].reshape(KS * KS, 1) * masks], axis=0)  # (2KS^2, HWp)

    w1 = params["ca_w1"].astype(jnp.float32)                   # (mid, C)
    b1 = params["ca_b1"].reshape(mid, 1).astype(jnp.float32)
    w2 = params["ca_w2"].astype(jnp.float32)                   # (C, mid)
    b2 = params["ca_b2"].reshape(C, 1).astype(jnp.float32)
    sab = params["sa_b"].reshape(-1).astype(jnp.float32)       # (1,)

    # ---- VMEM budget (generation-aware: stays far below v7x's 64 MiB) ----
    tile_bytes = TB * C * HWp * itemsize
    vmem_need = 2 * 2 * tile_bytes + wmask.size * 4 + (2 << 20)
    vmem_limit = int(max(32 * 1024 * 1024, min(64 * 1024 * 1024, 2 * vmem_need)))

    # Deepen the pipeline only when tiles are tiny and the grid is long (hides DMA latency).
    use_multibuf = (G >= 4) and (tile_bytes < 256 * 1024)

    def _io_spec():
        if use_multibuf:
            return pl.BlockSpec((TB, C, HWp), lambda b: (b, 0, 0),
                                pipeline_mode=pl.Buffered(3))
        return pl.BlockSpec((TB, C, HWp), lambda b: (b, 0, 0))

    kern = functools.partial(_cbam_kernel, W=W, KS=KS, HW=HW, TB=TB)
    out = pl.pallas_call(
        kern,
        out_shape=jax.ShapeDtypeStruct((B_pad, C, HWp), dtype),
        grid=(G,),
        in_specs=[
            _io_spec(),
            pl.BlockSpec((mid, C), lambda b: (0, 0)),
            pl.BlockSpec((mid, 1), lambda b: (0, 0)),
            pl.BlockSpec((C, mid), lambda b: (0, 0)),
            pl.BlockSpec((C, 1), lambda b: (0, 0)),
            pl.BlockSpec((2 * KS * KS, HWp), lambda b: (0, 0)),
            pl.BlockSpec(memory_space=pltpu.MemorySpace.SMEM),
        ],
        out_specs=_io_spec(),
        compiler_params=pltpu.CompilerParams(
            dimension_semantics=("parallel",),    # shard batch blocks across v7x's 2 TCs
            vmem_limit_bytes=vmem_limit),
    )(x, w1, b1, w2, b2, wmask, sab)

    if B_pad != B or HWp != HW:
        out = out[:B, :, :HW]
    return out.reshape(B, C, H, W)


# -----------------------------------------------------------------------------
# Pure-JAX reference (mirrors the PyTorch module exactly) for a correctness check.
# -----------------------------------------------------------------------------
def cbam_reference(params, x, *, kernel_size=3):
    pad = kernel_size // 2
    avg = jnp.mean(x, axis=(2, 3))
    mx = jnp.max(x, axis=(2, 3))

    def mlp(v):
        h = jnp.maximum(v @ params["ca_w1"].T + params["ca_b1"], 0.0)
        return h @ params["ca_w2"].T + params["ca_b2"]

    sig = jax.nn.sigmoid(mlp(avg) + mlp(mx))
    fp = x * sig[:, :, None, None]
    pool = jnp.concatenate([jnp.max(fp, axis=1, keepdims=True),
                            jnp.mean(fp, axis=1, keepdims=True)], axis=1)   # cat([max, avg])
    conv = lax.conv_general_dilated(
        pool, params["sa_w"], window_strides=(1, 1),
        padding=[(pad, pad), (pad, pad)],
        dimension_numbers=("NCHW", "OIHW", "NCHW"))
    att = jax.nn.sigmoid(conv + params["sa_b"].reshape(1, 1, 1, 1))
    return att * fp


def init_params(key, C, reduction_ratio, kernel_size):
    mid = int(C / float(reduction_ratio))
    ks = jax.random.split(key, 6)

    def w(k, shape, s=0.05):
        return (s * jax.random.normal(k, shape)).astype(jnp.float32)

    return dict(
        ca_w1=w(ks[0], (mid, C)), ca_b1=w(ks[1], (mid,)),      # Linear(C -> mid)
        ca_w2=w(ks[2], (C, mid)), ca_b2=w(ks[3], (C,)),        # Linear(mid -> C)
        sa_w=w(ks[4], (1, 2, kernel_size, kernel_size)),       # Conv2d(2 -> 1, KSxKS)
        sa_b=w(ks[5], (1,)),
    )


if __name__ == "__main__":
    B, C, H, W = 2, 4, 16, 16
    REDUCTION_RATIO, KERNEL_SIZE = 2, 3

    key = jax.random.PRNGKey(0)
    kx, kp = jax.random.split(key)
    x = jax.random.normal(kx, (B, C, H, W), dtype=jnp.float32)   # NCHW like PyTorch
    params = init_params(kp, C, REDUCTION_RATIO, KERNEL_SIZE)

    fwd = jax.jit(functools.partial(cbam_forward, kernel_size=KERNEL_SIZE))
    out = fwd(params, x)
    jax.block_until_ready(out)

    ref = cbam_reference(params, x, kernel_size=KERNEL_SIZE)
    assert out.shape == (B, C, H, W)
    err = float(jnp.max(jnp.abs(out - ref)))
    assert err < 1e-4, f"max abs error {err}"
    print("KERNEL_OK")
</pallas_src>

<mosaic_0001>
module attributes {stable_mosaic.version = 11 : i64} {
  func.func @_cbam_kernel(%arg0: i32, %arg1: memref<1x4x256xf32, #tpu.memory_space<vmem>>, %arg2: memref<2x4xf32, #tpu.memory_space<vmem>>, %arg3: memref<2x1xf32, #tpu.memory_space<vmem>>, %arg4: memref<4x2xf32, #tpu.memory_space<vmem>>, %arg5: memref<4x1xf32, #tpu.memory_space<vmem>>, %arg6: memref<18x256xf32, #tpu.memory_space<vmem>>, %arg7: memref<1xf32, #tpu.memory_space<smem>>, %arg8: memref<1x4x256xf32, #tpu.memory_space<vmem>>) attributes {dimension_semantics = [#tpu.dimension_semantics<parallel>], iteration_bounds = array<i64: 2>, scalar_prefetch = 0 : i64, scratch_operands = 0 : i64, tpu.core_type = #tpu.core_type<tc>, window_params = [{transform_indices = @transform_0, window_bounds = array<i64: 1, 4, 256>}, {pipeline_mode = #tpu.pipeline_mode<synchronous>, transform_indices = @transform_1, window_bounds = array<i64: 2, 4>}, {pipeline_mode = #tpu.pipeline_mode<synchronous>, transform_indices = @transform_2, window_bounds = array<i64: 2, 1>}, {pipeline_mode = #tpu.pipeline_mode<synchronous>, transform_indices = @transform_3, window_bounds = array<i64: 4, 2>}, {pipeline_mode = #tpu.pipeline_mode<synchronous>, transform_indices = @transform_4, window_bounds = array<i64: 4, 1>}, {pipeline_mode = #tpu.pipeline_mode<synchronous>, transform_indices = @transform_5, window_bounds = array<i64: 18, 256>}, {transform_indices = @transform_6, window_bounds = array<i64: 1>}, {transform_indices = @transform_7, window_bounds = array<i64: 1, 4, 256>}]} {
    %c0 = arith.constant 0 : index
    %c0_0 = arith.constant 0 : index
    %c0_1 = arith.constant 0 : index
    %0 = vector.load %arg1[%c0, %c0_0, %c0_1] : memref<1x4x256xf32, #tpu.memory_space<vmem>>, vector<1x4x256xf32>
    %cst = arith.constant dense<0.000000e+00> : vector<1x4xf32>
    %1 = vector.multi_reduction <add>, %0, %cst [2] : vector<1x4x256xf32> to vector<1x4xf32>
    %cst_2 = arith.constant 2.560000e+02 : f32
    %2 = vector.broadcast %cst_2 : f32 to vector<1x4xf32>
    %3 = arith.divf %1, %2 : vector<1x4xf32>
    %cst_3 = arith.constant dense<0xFF800000> : vector<1x4xf32>
    %4 = vector.multi_reduction <maximumf>, %0, %cst_3 [2] : vector<1x4x256xf32> to vector<1x4xf32>
    %5 = tpu.concatenate %3, %4 in 0 : vector<1x4xf32>, vector<1x4xf32> -> vector<2x4xf32>
    %c0_4 = arith.constant 0 : index
    %c0_5 = arith.constant 0 : index
    %6 = vector.load %arg2[%c0_4, %c0_5] : memref<2x4xf32, #tpu.memory_space<vmem>>, vector<2x4xf32>
    %cst_6 = arith.constant dense<0.000000e+00> : vector<2x2xf32>
    %7 = tpu.matmul %6, %5, %cst_6 {dimension_numbers = #tpu.dot_dimension_numbers<[1], [1], [0], [0], [0, 0, 1, 0], [], []>} : vector<2x4xf32>, vector<2x4xf32>, vector<2x2xf32> -> vector<2x2xf32>
    %c0_7 = arith.constant 0 : index
    %c0_8 = arith.constant 0 : index
    %8 = vector.load %arg3[%c0_7, %c0_8] : memref<2x1xf32, #tpu.memory_space<vmem>>, vector<2x1xf32>
    %9 = vector.broadcast %8 : vector<2x1xf32> to vector<2x2xf32>
    %10 = arith.addf %7, %9 : vector<2x2xf32>
    %cst_9 = arith.constant 0.000000e+00 : f32
    %11 = vector.broadcast %cst_9 : f32 to vector<2x2xf32>
    %12 = arith.maximumf %10, %11 : vector<2x2xf32>
    %c0_10 = arith.constant 0 : index
    %c0_11 = arith.constant 0 : index
    %13 = vector.load %arg4[%c0_10, %c0_11] : memref<4x2xf32, #tpu.memory_space<vmem>>, vector<4x2xf32>
    %cst_12 = arith.constant dense<0.000000e+00> : vector<4x2xf32>
    %14 = tpu.matmul %13, %12, %cst_12 {dimension_numbers = #tpu.dot_dimension_numbers<[1], [0], [0], [1], [0, 0, 1, 1], [], []>} : vector<4x2xf32>, vector<2x2xf32>, vector<4x2xf32> -> vector<4x2xf32>
    %c0_13 = arith.constant 0 : index
    %c0_14 = arith.constant 0 : index
    %15 = vector.load %arg5[%c0_13, %c0_14] : memref<4x1xf32, #tpu.memory_space<vmem>>, vector<4x1xf32>
    %16 = vector.broadcast %15 : vector<4x1xf32> to vector<4x2xf32>
    %17 = arith.addf %14, %16 : vector<4x2xf32>
    %18 = vector.extract_strided_slice %17 {offsets = [0, 0], sizes = [4, 1], strides = [1, 1]} : vector<4x2xf32> to vector<4x1xf32>
    %19 = vector.extract_strided_slice %17 {offsets = [0, 1], sizes = [4, 1], strides = [1, 1]} : vector<4x2xf32> to vector<4x1xf32>
    %20 = arith.addf %18, %19 : vector<4x1xf32>
    %21 = arith.negf %20 : vector<4x1xf32>
    %22 = math.exp %21 : vector<4x1xf32>
    %cst_15 = arith.constant 1.000000e+00 : f32
    %23 = vector.broadcast %cst_15 : f32 to vector<4x1xf32>
    %24 = arith.addf %23, %22 : vector<4x1xf32>
    %25 = arith.divf %23, %24 : vector<4x1xf32>
    %26 = tpu.transpose %25, [1, 0] : vector<4x1xf32> -> vector<1x4xf32>
    %27 = vector.shape_cast %26 : vector<1x4xf32> to vector<1x4x1xf32>
    %28 = vector.broadcast %27 : vector<1x4x1xf32> to vector<1x4x256xf32>
    %29 = arith.mulf %0, %28 : vector<1x4x256xf32>
    %cst_16 = arith.constant dense<0xFF800000> : vector<1x256xf32>
    %30 = vector.multi_reduction <maximumf>, %29, %cst_16 [1] : vector<1x4x256xf32> to vector<1x256xf32>
    %cst_17 = arith.constant dense<0.000000e+00> : vector<1x256xf32>
    %31 = vector.multi_reduction <add>, %29, %cst_17 [1] : vector<1x4x256xf32> to vector<1x256xf32>
    %cst_18 = arith.constant 4.000000e+00 : f32
    %32 = vector.broadcast %cst_18 : f32 to vector<1x256xf32>
    %33 = arith.divf %31, %32 : vector<1x256xf32>
    %34 = tpu.concatenate %30, %33 in 0 : vector<1x256xf32>, vector<1x256xf32> -> vector<2x256xf32>
    %cst_19 = arith.constant 0.000000e+00 : f32
    %35 = vector.broadcast %cst_19 : f32 to vector<1x256xf32>
    %c17_i32 = arith.constant 17 : i32
    %36 = tpu.dynamic_rotate %34 by %c17_i32 dim 1 : vector<2x256xf32>, i32 -> vector<2x256xf32>
    %37 = vector.extract_strided_slice %36 {offsets = [0, 0], sizes = [1, 256], strides = [1, 1]} : vector<2x256xf32> to vector<1x256xf32>
    %c0_20 = arith.constant 0 : index
    %c0_21 = arith.constant 0 : index
    %38 = vector.load %arg6[%c0_20, %c0_21] : memref<18x256xf32, #tpu.memory_space<vmem>>, vector<1x256xf32>
    %39 = arith.mulf %37, %38 : vector<1x256xf32>
    %40 = vector.extract_strided_slice %36 {offsets = [1, 0], sizes = [1, 256], strides = [1, 1]} : vector<2x256xf32> to vector<1x256xf32>
    %c9 = arith.constant 9 : index
    %c0_22 = arith.constant 0 : index
    %41 = vector.load %arg6[%c9, %c0_22] : memref<18x256xf32, #tpu.memory_space<vmem>>, vector<1x256xf32>
    %42 = arith.mulf %40, %41 : vector<1x256xf32>
    %43 = arith.addf %39, %42 : vector<1x256xf32>
    %44 = arith.addf %35, %43 : vector<1x256xf32>
    %c16_i32 = arith.constant 16 : i32
    %45 = tpu.dynamic_rotate %34 by %c16_i32 dim 1 : vector<2x256xf32>, i32 -> vector<2x256xf32>
    %46 = vector.extract_strided_slice %45 {offsets = [0, 0], sizes = [1, 256], strides = [1, 1]} : vector<2x256xf32> to vector<1x256xf32>
    %c1 = arith.constant 1 : index
    %c0_23 = arith.constant 0 : index
    %47 = vector.load %arg6[%c1, %c0_23] : memref<18x256xf32, #tpu.memory_space<vmem>>, vector<1x256xf32>
    %48 = arith.mulf %46, %47 : vector<1x256xf32>
    %49 = vector.extract_strided_slice %45 {offsets = [1, 0], sizes = [1, 256], strides = [1, 1]} : vector<2x256xf32> to vector<1x256xf32>
    %c10 = arith.constant 10 : index
    %c0_24 = arith.constant 0 : index
    %50 = vector.load %arg6[%c10, %c0_24] : memref<18x256xf32, #tpu.memory_space<vmem>>, vector<1x256xf32>
    %51 = arith.mulf %49, %50 : vector<1x256xf32>
    %52 = arith.addf %48, %51 : vector<1x256xf32>
    %53 = arith.addf %44, %52 : vector<1x256xf32>
    %c15_i32 = arith.constant 15 : i32
    %54 = tpu.dynamic_rotate %34 by %c15_i32 dim 1 : vector<2x256xf32>, i32 -> vector<2x256xf32>
    %55 = vector.extract_strided_slice %54 {offsets = [0, 0], sizes = [1, 256], strides = [1, 1]} : vector<2x256xf32> to vector<1x256xf32>
    %c2 = arith.constant 2 : index
    %c0_25 = arith.constant 0 : index
    %56 = vector.load %arg6[%c2, %c0_25] : memref<18x256xf32, #tpu.memory_space<vmem>>, vector<1x256xf32>
    %57 = arith.mulf %55, %56 : vector<1x256xf32>
    %58 = vector.extract_strided_slice %54 {offsets = [1, 0], sizes = [1, 256], strides = [1, 1]} : vector<2x256xf32> to vector<1x256xf32>
    %c11 = arith.constant 11 : index
    %c0_26 = arith.constant 0 : index
    %59 = vector.load %arg6[%c11, %c0_26] : memref<18x256xf32, #tpu.memory_space<vmem>>, vector<1x256xf32>
    %60 = arith.mulf %58, %59 : vector<1x256xf32>
    %61 = arith.addf %57, %60 : vector<1x256xf32>
    %62 = arith.addf %53, %61 : vector<1x256xf32>
    %c1_i32 = arith.constant 1 : i32
    %63 = tpu.dynamic_rotate %34 by %c1_i32 dim 1 : vector<2x256xf32>, i32 -> vector<2x256xf32>
    %64 = vector.extract_strided_slice %63 {offsets = [0, 0], sizes = [1, 256], strides = [1, 1]} : vector<2x256xf32> to vector<1x256xf32>
    %c3 = arith.constant 3 : index
    %c0_27 = arith.constant 0 : index
    %65 = vector.load %arg6[%c3, %c0_27] : memref<18x256xf32, #tpu.memory_space<vmem>>, vector<1x256xf32>
    %66 = arith.mulf %64, %65 : vector<1x256xf32>
    %67 = vector.extract_strided_slice %63 {offsets = [1, 0], sizes = [1, 256], strides = [1, 1]} : vector<2x256xf32> to vector<1x256xf32>
    %c12 = arith.constant 12 : index
    %c0_28 = arith.constant 0 : index
    %68 = vector.load %arg6[%c12, %c0_28] : memref<18x256xf32, #tpu.memory_space<vmem>>, vector<1x256xf32>
    %69 = arith.mulf %67, %68 : vector<1x256xf32>
    %70 = arith.addf %66, %69 : vector<1x256xf32>
    %71 = arith.addf %62, %70 : vector<1x256xf32>
    %72 = vector.extract_strided_slice %34 {offsets = [0, 0], sizes = [1, 256], strides = [1, 1]} : vector<2x256xf32> to vector<1x256xf32>
    %c4 = arith.constant 4 : index
    %c0_29 = arith.constant 0 : index
    %73 = vector.load %arg6[%c4, %c0_29] : memref<18x256xf32, #tpu.memory_space<vmem>>, vector<1x256xf32>
    %74 = arith.mulf %72, %73 : vector<1x256xf32>
    %75 = vector.extract_strided_slice %34 {offsets = [1, 0], sizes = [1, 256], strides = [1, 1]} : vector<2x256xf32> to vector<1x256xf32>
    %c13 = arith.constant 13 : index
    %c0_30 = arith.constant 0 : index
    %76 = vector.load %arg6[%c13, %c0_30] : memref<18x256xf32, #tpu.memory_space<vmem>>, vector<1x256xf32>
    %77 = arith.mulf %75, %76 : vector<1x256xf32>
    %78 = arith.addf %74, %77 : vector<1x256xf32>
    %79 = arith.addf %71, %78 : vector<1x256xf32>
    %c255_i32 = arith.constant 255 : i32
    %80 = tpu.dynamic_rotate %34 by %c255_i32 dim 1 : vector<2x256xf32>, i32 -> vector<2x256xf32>
    %81 = vector.extract_strided_slice %80 {offsets = [0, 0], sizes = [1, 256], strides = [1, 1]} : vector<2x256xf32> to vector<1x256xf32>
    %c5 = arith.constant 5 : index
    %c0_31 = arith.constant 0 : index
    %82 = vector.load %arg6[%c5, %c0_31] : memref<18x256xf32, #tpu.memory_space<vmem>>, vector<1x256xf32>
    %83 = arith.mulf %81, %82 : vector<1x256xf32>
    %84 = vector.extract_strided_slice %80 {offsets = [1, 0], sizes = [1, 256], strides = [1, 1]} : vector<2x256xf32> to vector<1x256xf32>
    %c14 = arith.constant 14 : index
    %c0_32 = arith.constant 0 : index
    %85 = vector.load %arg6[%c14, %c0_32] : memref<18x256xf32, #tpu.memory_space<vmem>>, vector<1x256xf32>
    %86 = arith.mulf %84, %85 : vector<1x256xf32>
    %87 = arith.addf %83, %86 : vector<1x256xf32>
    %88 = arith.addf %79, %87 : vector<1x256xf32>
    %c241_i32 = arith.constant 241 : i32
    %89 = tpu.dynamic_rotate %34 by %c241_i32 dim 1 : vector<2x256xf32>, i32 -> vector<2x256xf32>
    %90 = vector.extract_strided_slice %89 {offsets = [0, 0], sizes = [1, 256], strides = [1, 1]} : vector<2x256xf32> to vector<1x256xf32>
    %c6 = arith.constant 6 : index
    %c0_33 = arith.constant 0 : index
    %91 = vector.load %arg6[%c6, %c0_33] : memref<18x256xf32, #tpu.memory_space<vmem>>, vector<1x256xf32>
    %92 = arith.mulf %90, %91 : vector<1x256xf32>
    %93 = vector.extract_strided_slice %89 {offsets = [1, 0], sizes = [1, 256], strides = [1, 1]} : vector<2x256xf32> to vector<1x256xf32>
    %c15 = arith.constant 15 : index
    %c0_34 = arith.constant 0 : index
    %94 = vector.load %arg6[%c15, %c0_34] : memref<18x256xf32, #tpu.memory_space<vmem>>, vector<1x256xf32>
    %95 = arith.mulf %93, %94 : vector<1x256xf32>
    %96 = arith.addf %92, %95 : vector<1x256xf32>
    %97 = arith.addf %88, %96 : vector<1x256xf32>
    %c240_i32 = arith.constant 240 : i32
    %98 = tpu.dynamic_rotate %34 by %c240_i32 dim 1 : vector<2x256xf32>, i32 -> vector<2x256xf32>
    %99 = vector.extract_strided_slice %98 {offsets = [0, 0], sizes = [1, 256], strides = [1, 1]} : vector<2x256xf32> to vector<1x256xf32>
    %c7 = arith.constant 7 : index
    %c0_35 = arith.constant 0 : index
    %100 = vector.load %arg6[%c7, %c0_35] : memref<18x256xf32, #tpu.memory_space<vmem>>, vector<1x256xf32>
    %101 = arith.mulf %99, %100 : vector<1x256xf32>
    %102 = vector.extract_strided_slice %98 {offsets = [1, 0], sizes = [1, 256], strides = [1, 1]} : vector<2x256xf32> to vector<1x256xf32>
    %c16 = arith.constant 16 : index
    %c0_36 = arith.constant 0 : index
    %103 = vector.load %arg6[%c16, %c0_36] : memref<18x256xf32, #tpu.memory_space<vmem>>, vector<1x256xf32>
    %104 = arith.mulf %102, %103 : vector<1x256xf32>
    %105 = arith.addf %101, %104 : vector<1x256xf32>
    %106 = arith.addf %97, %105 : vector<1x256xf32>
    %c239_i32 = arith.constant 239 : i32
    %107 = tpu.dynamic_rotate %34 by %c239_i32 dim 1 : vector<2x256xf32>, i32 -> vector<2x256xf32>
    %108 = vector.extract_strided_slice %107 {offsets = [0, 0], sizes = [1, 256], strides = [1, 1]} : vector<2x256xf32> to vector<1x256xf32>
    %c8 = arith.constant 8 : index
    %c0_37 = arith.constant 0 : index
    %109 = vector.load %arg6[%c8, %c0_37] : memref<18x256xf32, #tpu.memory_space<vmem>>, vector<1x256xf32>
    %110 = arith.mulf %108, %109 : vector<1x256xf32>
    %111 = vector.extract_strided_slice %107 {offsets = [1, 0], sizes = [1, 256], strides = [1, 1]} : vector<2x256xf32> to vector<1x256xf32>
    %c17 = arith.constant 17 : index
    %c0_38 = arith.constant 0 : index
    %112 = vector.load %arg6[%c17, %c0_38] : memref<18x256xf32, #tpu.memory_space<vmem>>, vector<1x256xf32>
    %113 = arith.mulf %111, %112 : vector<1x256xf32>
    %114 = arith.addf %110, %113 : vector<1x256xf32>
    %115 = arith.addf %106, %114 : vector<1x256xf32>
    %c0_39 = arith.constant 0 : index
    %116 = memref.load %arg7[%c0_39] : memref<1xf32, #tpu.memory_space<smem>>
    %117 = vector.broadcast %116 : f32 to vector<1x256xf32>
    %118 = arith.addf %115, %117 : vector<1x256xf32>
    %119 = arith.negf %118 : vector<1x256xf32>
    %120 = math.exp %119 : vector<1x256xf32>
    %cst_40 = arith.constant 1.000000e+00 : f32
    %121 = vector.broadcast %cst_40 : f32 to vector<1x256xf32>
    %122 = arith.addf %121, %120 : vector<1x256xf32>
    %123 = arith.divf %121, %122 : vector<1x256xf32>
    %124 = vector.shape_cast %123 : vector<1x256xf32> to vector<1x1x256xf32>
    %125 = vector.broadcast %124 : vector<1x1x256xf32> to vector<1x4x256xf32>
    %126 = arith.mulf %29, %125 : vector<1x4x256xf32>
    %c0_41 = arith.constant 0 : index
    %c0_42 = arith.constant 0 : index
    %c0_43 = arith.constant 0 : index
    %127 = vector.load %arg8[%c0_41, %c0_42, %c0_43] : memref<1x4x256xf32, #tpu.memory_space<vmem>>, vector<1x4x256xf32>
    tpu.vector_store %arg8[%c0_41, %c0_42, %c0_43], %126 {strides = array<i32>} : memref<1x4x256xf32, #tpu.memory_space<vmem>>, vector<1x4x256xf32>,
    return
  }
  func.func @transform_0(%arg0: i32) -> (i32, i32, i32) {
    %c0_i32 = arith.constant 0 : i32
    %c0_i32_0 = arith.constant 0 : i32
    %c0_i32_1 = arith.constant 0 : i32
    return %arg0, %c0_i32, %c0_i32_0 : i32, i32, i32
  }
  func.func @transform_1(%arg0: i32) -> (i32, i32) {
    %c0_i32 = arith.constant 0 : i32
    %c0_i32_0 = arith.constant 0 : i32
    %c0_i32_1 = arith.constant 0 : i32
    return %c0_i32, %c0_i32_0 : i32, i32
  }
  func.func @transform_2(%arg0: i32) -> (i32, i32) {
    %c0_i32 = arith.constant 0 : i32
    %c0_i32_0 = arith.constant 0 : i32
    %c0_i32_1 = arith.constant 0 : i32
    return %c0_i32, %c0_i32_0 : i32, i32
  }
  func.func @transform_3(%arg0: i32) -> (i32, i32) {
    %c0_i32 = arith.constant 0 : i32
    %c0_i32_0 = arith.constant 0 : i32
    %c0_i32_1 = arith.constant 0 : i32
    return %c0_i32, %c0_i32_0 : i32, i32
  }
  func.func @transform_4(%arg0: i32) -> (i32, i32) {
    %c0_i32 = arith.constant 0 : i32
    %c0_i32_0 = arith.constant 0 : i32
    %c0_i32_1 = arith.constant 0 : i32
    return %c0_i32, %c0_i32_0 : i32, i32
  }
  func.func @transform_5(%arg0: i32) -> (i32, i32) {
    %c0_i32 = arith.constant 0 : i32
    %c0_i32_0 = arith.constant 0 : i32
    %c0_i32_1 = arith.constant 0 : i32
    return %c0_i32, %c0_i32_0 : i32, i32
  }
  func.func @transform_6(%arg0: i32) -> i32 {
    %c0_i32 = arith.constant 0 : i32
    %c0_i32_0 = arith.constant 0 : i32
    return %c0_i32 : i32
  }
  func.func @transform_7(%arg0: i32) -> (i32, i32, i32) {
    %c0_i32 = arith.constant 0 : i32
    %c0_i32_0 = arith.constant 0 : i32
    %c0_i32_1 = arith.constant 0 : i32
    return %arg0, %c0_i32, %c0_i32_0 : i32, i32, i32
  }
}

</mosaic_0001>

<bundles_post_ra>
// kernel: mul.9
= control target key start
LH: loop header
LB: loop body
LE: loop exit
PB: predicated region body
PF: predicated region fallthrough
CT: control target
= control target key end

     0   :  { %vm8_vm0 = vcmask 23552   ;;  %s33_s8 = smov 3   ;;  %vm14_vm1 = vcmask 72752   ;;  %vm20_vm2 = vcmask 48152   ;;  %s50_s0 = inlined_call_operand.vmem [shape: f32[3,3], index: 0, kind: input, shape index: {}]   ;;  %s51_s1 = inlined_call_operand.vmem [shape: f32[9], index: 1, kind: output, shape index: {}]  }
   0x1   :  { %v5_v0 = vld [vmem:[%s50_s0] sm:$0xf]  ;;  %s32_s0 = smov 6  }
   0x2   :  { %6 = vst [vmem:[#allocation1] sm:$0xf] %v5_v0 }
   0x9   :  { %v11_v1 = vld [vmem:[#allocation1 + $0x2] sm:$0x1]   ;;  %v7_v2 = vld [vmem:[#allocation1] sm:$0x1]   ;;  %v17_v3 = vld [vmem:[#allocation1 + $0x1] sm:$0x1]  }
   0xa   :  { %12 = vrot.lane.b32.xlu0 %v11_v1, %s32_s0  ;;  %9 = vst.msk [vmem:[#allocation0] sm:$0x1] %vm8_vm0, %v7_v2  }
   0xe   :  { %18 = vrot.lane.b32.xlu0 %v17_v3, %s33_s8 }
  0x7c   :  { %v13_v4 = vpop.permute.xlu0 %12  }
  0x7d   :  { %15 = vst.msk [vmem:[#allocation0] sm:$0x1] %vm14_vm1, %v13_v4  }
  0x80   :  { %v19_v5 = vpop.permute.xlu0 %18  }
  0x81   :  { %21 = vst.msk [vmem:[#allocation0] sm:$0x1] %vm20_vm2, %v19_v5  }
  0x88   :  { %v26_v6 = vld [vmem:[#allocation0] sm:$0x1] }
  0x89   :  { %29 = vst [vmem:[%s51_s1] sm:$0x1] %v26_v6 }

// kernel: cbam_forward.1
= control target key start
LH: loop header
LB: loop body
LE: loop exit
PB: predicated region body
PF: predicated region fallthrough
CT: control target
= control target key end

     0   :  { %s1228_s26 = smov 0   ;;  %s1517_s0 = inlined_call_operand.vmem [shape: f32[2,4,256], index: 0, kind: input, shape index: {}]   ;;  %s1518_s1 = inlined_call_operand.vmem [shape: f32[2,4], index: 1, kind: input, shape index: {}]   ;;  %s1519_s2 = inlined_call_operand.vmem [shape: f32[2,1], index: 2, kind: input, shape index: {}]   ;;  %s1520_s3 = inlined_call_operand.vmem [shape: f32[4,2], index: 3, kind: input, shape index: {}]   ;;  %s1521_s4 = inlined_call_operand.vmem [shape: f32[4,1], index: 4, kind: input, shape index: {}]   ;;  %s1522_s5 = inlined_call_operand.vmem [shape: f32[18,256], index: 5, kind: input, shape index: {}]   ;;  %s1523_s6 = inlined_call_operand.<no memory space> [shape: f32[1], index: 6, kind: input, shape index: {}]   ;;  %s1524_s7 = inlined_call_operand.vmem [shape: f32[2,4,256], index: 7, kind: output, shape index: {}]  }
   0x1   :  { %12 = sst [smem:[#allocation2]] %s1523_s6 }
   0x2 LB: > { %s1079_s27 = sadd.s32 4294967295, %s1171_s26   ;;  %p1083_p0 = scmp.ge.s32.totalorder %s1171_s26, 1  ;;  %s1171_s26 = sphi %s1228_s26, %s18_s26  }
   0x3   : > { %p238_p1 = scmp.lt.s32.totalorder %s1171_s26, 3 }
   0x5   : > { %p239_p2 = pnand %p1083_p0, %p238_p1 }
   0x6   : > { %p270_p3 = scmp.lt.s32.totalorder (!%p239_p2), %s1079_s27, 1  ;;  %s1176_s16 = smov (!%p239_p2), 127  }
   0x7   : > { %242 = sbr.rel (%p239_p2) target bundleno = 1188 (0x4a4), region = 48  ;;  %s1178_s17 = smov (!%p239_p2), 15  }
   0x8   : > { %s1179_s18 = smov (!%p239_p2), 17   ;;  %s1180_s19 = smov (!%p239_p2), 16  }
   0x9   : > { %s1181_s20 = smov (!%p239_p2), 112   ;;  %s1182_s21 = smov (!%p239_p2), 1  }
   0xa   : > { %s1183_s22 = smov (!%p239_p2), 111   ;;  %s1184_s23 = smov (!%p239_p2), 113  }
   0xc   : > { %s1526_s27 = smov (!%p270_p3, %s1079_s27), 1  ;;  %vm284_vm0 = vcmask 1043456   ;;  %v1173_v8 = vmov 0.0   ;;  %vm1174_vm1 = vmmov 0   ;;  %v314_v9 = vld [vmem:[%s1519_s2] sm:$0x3]  ;;  %v298_v12 = vlaneseq }
   0xd   : > { %s1114_s6 = sshll.u32 %s1526_s27, 3  ;;  %1120 = vmatprep.subr.mxu0 %v1173_v8  ;;  %1125 = vmatprep.subr.mxu1 %v1173_v8  ;;  %v1175_v10 = vmov 0   ;;  %v399_v11 = vld [vmem:[%s1521_s4] sm:$0xf]  ;;  %vm311_vm2 = vcmask 1040384   ;;  %vm320_vm3 = vcmask 31744  }
   0xe   : > { %s274_s30 = scalar_lea.vmem %s1517_s0, %s1114_s6  ;;  %1122 = vmatprep.mubr.msk.f32.mxu0 %vm1174_vm1, %v1173_v8  ;;  %1127 = vmatprep.mubr.msk.f32.mxu1 %vm1174_vm1, %v1173_v8  ;;  %v1260_v13 = vand.u32 127, %v298_v12  ;;  %v1262_v14 = vshrl.u32 %v298_v12, 7  ;;  %v313_v22 = vld [vmem:[%s1518_s1] sm:$0x3]  ;;  %vm409_vm4 = vcmask 1041408   ;;  %vm405_vm5 = vcmask 15360  }
   0xf   : > { %v1244_v0 = vld [vmem:[%s274_s30] sm:$0xff]  ;;  %1150 = vset.pattern.permute.xlu1 %v1175_v10  ;;  %1151 = vset.pattern.permute.xlu0 %v1175_v10  ;;  %v1177_v42 = vmov 839922192  }
  0x10   : > { %v282_v1 = vcombine.high %v1244_v0, %v1244_v0  ;;  %v285_v2 = vsel %vm284_vm0, %v1244_v0, 0.0  ;;  %v292_v4 = vsel %vm284_vm0, %v1244_v0, -inf  ;;  %317 = vperm.xlu1 %1150, %v314_v9   ;;  %v302_v16 = vsub.s32 %v1260_v13, %v1262_v14  ;;  %v398_v28 = vld [vmem:[%s1520_s3] sm:$0xf] }
  0x11   : > { %v1275_v39 = vsub.s32 0, %v1262_v14  ;;  %v535_v43 = vunpack.c.l.s4 %v1177_v42  ;;  %vm583_vm6 = vcmp.lt.s32.totalorder %v1260_v13, 17  ;;  %vm629_vm7 = vcmp.lt.s32.totalorder %v1260_v13, 16 }
  0x12   : > { %v286_v3 = vsel %vm284_vm0, %v282_v1, 0.0  ;;  %v293_v5 = vsel %vm284_vm0, %v282_v1, -inf  ;;  %vm676_vm8 = vcmp.lt.s32.totalorder %v1260_v13, 15  ;;  %vm904_vm9 = vcmp.lt.s32.totalorder %v1260_v13, 112 }
  0x13   : > { %v287_v6 = vadd.f32 %v286_v3, %v285_v2  ;;  %v294_v7 = vmax.f32 %v292_v4, %v293_v5  ;;  %v536_v44 = vunpack.c.0.s8 %v535_v43  ;;  %vm723_vm10 = vcmp.lt.s32.totalorder %v1260_v13, 1 }
  0x14   : > { %402 = vperm.xlu1 %1150, %v399_v11   ;;  %vm810_vm11 = vcmp.lt.s32.totalorder %v1260_v13, 127  ;;  %vm857_vm12 = vcmp.lt.s32.totalorder %v1260_v13, 113  ;;  %vm951_vm13 = vcmp.lt.s32.totalorder %v1260_v13, 111 }
  0x15   : > { %288 = vadd.xlane.f32.xlu0 %v287_v6  ;;  %v539_v45 = vsub.s32 %v536_v44, %v1262_v14 }
  0x19   : > { %295 = vmax.xlane.f32.xlu0 %v294_v7 }
  0x8b   : > { %v318_v23 = vpop.permute.xlu1 %317 }
  0x8f   : > { %v403_v29 = vpop.permute.xlu1 %402 }
  0x9e   : > { %v289_v15 = vpop.xlane.xlu0 %288 }
  0x9f   : > { %v291_v17 = vmul.f32 0.00390625, %v289_v15 }
  0xa1   : > { %v303_v19 = vrot.slane %v291_v17, %v302_v16 }
  0xa2   : > { %v296_v18 = vpop.xlane.xlu0 %295 }
  0xa3   : > { %v309_v20 = vrot.slane %v296_v18, %v302_v16 }
  0xa5   : > { %v312_v21 = vsel %vm311_vm2, %v303_v19, %v309_v20 }
  0xa6   : > { %1121 = vmatpush3.xpose.msk.msra.mxu0 %vm320_vm3, %v312_v21 }
  0xa9   : > { %1123 = vmatmul.mubr.msk.f32.vlgmr.msra.gmra.mxu0 %vm320_vm3, %v313_v22  ;;  %v1297_v22 = vsub.s32 1, %v1262_v14 }
 0x169   : > { %v393_v24 = vpop.f32.mrf.mxu0 }
 0x16a   : > { %v394_v25 = vadd.f32 %v393_v24, %v318_v23  ;;  %v1101_v24 = vld [vmem:[%s1522_s5 + $0x15] ss:$8 sm:$0x3] }
 0x16b   : > { %v1124_v26 = vpop.f32.mrf.mxu0 }
 0x16c   : > { %v397_v27 = vmax.f32 %v394_v25, 0.0  ;;  %v787_v25 = vrot.slane %v1101_v24, %v1275_v39  ;;  %v791_v26 = vrot.slane %v1101_v24, %v1297_v22 }
 0x16e   : > { %1126 = vmatpush3.msk.msra.mxu1 %vm409_vm4, %v397_v27 }
 0x16f   : > { %1128 = vmatmul.mubr.msk.f32.vlgmr.msra.gmra.mxu1 %vm405_vm5, %v398_v28  ;;  %v1100_v28 = vld [vmem:[%s1522_s5 + $0x4] ss:$8 sm:$0x3] }
 0x22f   : > { %v479_v30 = vpop.f32.mrf.mxu1 }
 0x230   : > { %v480_v31 = vadd.f32 %v479_v30, %v403_v29 }
 0x231   : > { %v1129_v32 = vpop.f32.mrf.mxu1 }
 0x232   : > { %484 = vrot.lane.b32.xlu0 %v480_v31, %s1176_s16  ;;  %v776_v32 = vrot.slane %v1100_v28, %v1297_v22 }
 0x2a4   : > { %v485_v33 = vpop.permute.xlu0 %484 }
 0x2a5   : > { %v487_v34 = vadd.f32 %v485_v33, %v480_v31  ;;  %v772_v31 = vrot.slane %v1100_v28, %v1275_v39  ;;  %v1318_v33 = vld [vmem:[%s1522_s5 + $0x7] ss:$8 sm:$0x3] }
 0x2a6   : > { %v913_v43 = vrot.slane %v1318_v33, %v1275_v39  ;;  %v917_v44 = vrot.slane %v1318_v33, %v1297_v22 }
 0x2a7   : > { %v1092_v35 = vmul.f32 -1.442695, %v487_v34  ;;  %v1323_v34 = vld [vmem:[%s1522_s5 + $0x20] ss:$8 sm:$0x3] }
 0x2a9   : > { %1153 = vpow2.f32 %v1092_v35 }
 0x2b6   : > { %v1154_v36 = vpop.eup %1153 }
 0x2b7   : > { %v491_v37 = vadd.f32 1.0, %v1154_v36 }
 0x2b9   : > { %1155 = vrcp.f32 %v491_v37 }
 0x2c6   : > { %v1156_v38 = vpop.eup %1155 }
 0x2c7   : > { %494 = vxpose.xlu1.b32.start.end [1/1] (short) (narrow) %v1156_v38, 8  ;;  %v1330_v38 = vld [vmem:[%s1522_s5] ss:$8 sm:$0x3] }
 0x343   : > { %v510_v40 = vpop.trf.xlu1 }
 0x344   : > { %v529_v41 = vrot.slane %v510_v40, %v1275_v39  ;;  %v1093_v40 = vld [vmem:[%s1522_s5 + $0x11] ss:$8 sm:$0x3] }
 0x346   : > { %531 = vbcast.lane.b32.xlu0 %v529_v41, 256 }
 0x3b8   : > { %v532_v46 = vpop.permute.xlu0 %531 }
 0x3b9   : > { %v540_v47 = vrot.slane %v532_v46, %v539_v45  ;;  %v928_v45 = vrot.slane %v1323_v34, %v1275_v39  ;;  %v1094_v46 = vld [vmem:[%s1522_s5 + $0x1] ss:$8 sm:$0x3] }
 0x3bb   : > { %v1280_v48 = vmul.f32 %v540_v47, %v1244_v0  ;;  %v932_v47 = vrot.slane %v1323_v34, %v1297_v22 }
 0x3bd   : > { %v544_v49 = vcombine.high %v1280_v48, %v1280_v48  ;;  %v546_v50 = vsel %vm284_vm0, %v1280_v48, -inf  ;;  %v560_v51 = vsel %vm284_vm0, %v1280_v48, 0.0 }
 0x3be   : > { %v547_v52 = vrot.slane %v546_v50, 4  ;;  %v561_v53 = vrot.slane %v560_v51, 4 }
 0x3bf   : > { %v553_v54 = vsel %vm284_vm0, %v544_v49, -inf  ;;  %v567_v55 = vsel %vm284_vm0, %v544_v49, 0.0  ;;  %v591_v49 = vrot.slane %v1330_v38, %v1275_v39 }
 0x3c0   : > { %v548_v56 = vmax.f32 %v546_v50, %v547_v52  ;;  %v554_v57 = vrot.slane %v553_v54, 4  ;;  %v562_v58 = vadd.f32 %v561_v53, %v560_v51  ;;  %v568_v59 = vrot.slane %v567_v55, 4  ;;  %v1095_v50 = vld [vmem:[%s1522_s5 + $0x12] ss:$8 sm:$0x3] }
 0x3c1   : > { %v1355_v51 = vld [vmem:[%s1522_s5 + $0x2] ss:$8 sm:$0x3] }
 0x3c2   : > { %v549_v60 = vrot.slane %v548_v56, 2  ;;  %v555_v61 = vmax.f32 %v553_v54, %v554_v57  ;;  %v563_v62 = vrot.slane %v562_v58, 2  ;;  %v569_v63 = vadd.f32 %v568_v59, %v567_v55 }
 0x3c3   : > { %v595_v54 = vrot.slane %v1330_v38, %v1297_v22  ;;  %v606_v55 = vrot.slane %v1093_v40, %v1275_v39 }
 0x3c4   : > { %v550_v0 = vmax.f32 %v548_v56, %v549_v60  ;;  %v556_v1 = vrot.slane %v555_v61, 2  ;;  %v564_v2 = vadd.f32 %v563_v62, %v562_v58  ;;  %v570_v3 = vrot.slane %v569_v63, 2  ;;  %v1097_v58 = vld [vmem:[%s1522_s5 + $0x13] ss:$8 sm:$0x3] }
 0x3c5   : > { %v610_v56 = vrot.slane %v1093_v40, %v1297_v22  ;;  %v642_v62 = vrot.slane %v1094_v46, %v1297_v22 }
 0x3c6   : > { %v551_v4 = vrot.slane %v550_v0, 1  ;;  %v557_v5 = vmax.f32 %v555_v61, %v556_v1  ;;  %v565_v6 = vrot.slane %v564_v2, 1  ;;  %v571_v7 = vadd.f32 %v570_v3, %v569_v63  ;;  %v1374_v63 = vld [vmem:[%s1522_s5 + $0x3] ss:$8 sm:$0x3] }
 0x3c7   : > { %v638_v61 = vrot.slane %v1094_v46, %v1275_v39  ;;  %v657_v1 = vrot.slane %v1095_v50, %v1297_v22  ;;  %v1099_v3 = vld [vmem:[%s1522_s5 + $0x14] ss:$8 sm:$0x3] }
 0x3c8   : > { %v566_v8 = vadd.f32 %v565_v6, %v564_v2  ;;  %v572_v9 = vrot.slane %v571_v7, 1  ;;  %v552_v10 = vmax.f32 %v550_v0, %v551_v4  ;;  %v558_v11 = vrot.slane %v557_v5, 1 }
 0x3c9   : > { %v653_v0 = vrot.slane %v1095_v50, %v1275_v39  ;;  %v685_v2 = vrot.slane %v1355_v51, %v1275_v39  ;;  %v689_v4 = vrot.slane %v1355_v51, %v1297_v22  ;;  %v704_v6 = vrot.slane %v1097_v58, %v1297_v22 }
 0x3ca   : > { %v573_v12 = vadd.f32 %v572_v9, %v571_v7  ;;  %v575_v15 = vmul.f32 0.25, %v566_v8  ;;  %v559_v18 = vmax.f32 %v557_v5, %v558_v11  ;;  %v700_v5 = vrot.slane %v1097_v58, %v1275_v39  ;;  %v1393_v7 = vld [vmem:[%s1522_s5 + $0x5] ss:$8 sm:$0x3] }
 0x3cb   : > { %v732_v11 = vrot.slane %v1374_v63, %v1275_v39 }
 0x3cc   : > { %v576_v16 = vmul.f32 0.25, %v573_v12  ;;  %v577_v17 = vsel %vm311_vm2, %v552_v10, %v575_v15  ;;  %v736_v12 = vrot.slane %v1374_v63, %v1297_v22  ;;  %v1402_v15 = vld [vmem:[%s1522_s5 + $0x16] ss:$8 sm:$0x3] }
 0x3cd   : > { %672 = vrot.lane.b32.xlu1 %v577_v17, %s1178_s17  ;;  %579 = vrot.lane.b32.xlu0 %v577_v17, %s1179_s18  ;;  %v794_v29 = vmul.f32 %v787_v25, %v577_v17  ;;  %v779_v41 = vmul.f32 %v772_v31, %v577_v17 }
 0x3ce   : > { %v578_v19 = vsel %vm311_vm2, %v559_v18, %v576_v16  ;;  %v1407_v16 = vld [vmem:[%s1522_s5 + $0x6] ss:$8 sm:$0x3] }
 0x3cf   : > { %v795_v30 = vmul.f32 %v791_v26, %v578_v19  ;;  %v798_v35 = vrot.slane %v794_v29, 1  ;;  %v780_v42 = vmul.f32 %v776_v32, %v578_v19  ;;  %v819_v26 = vrot.slane %v1393_v7, %v1275_v39  ;;  %v1431_v32 = vld [vmem:[%s1522_s5 + $0x17] ss:$8 sm:$0x3] }
 0x3d0   : > { %v823_v29 = vrot.slane %v1393_v7, %v1297_v22  ;;  %v866_v31 = vrot.slane %v1407_v16, %v1275_v39  ;;  %v881_v58 = vrot.slane %v1431_v32, %v1275_v39 }
 0x3d1   : > { %625 = vrot.lane.b32.xlu0 %v577_v17, %s1180_s19  ;;  %902 = vrot.lane.b32.xlu1 %v578_v19, %s1181_s20  ;;  %v799_v36 = vrot.slane %v795_v30, 1  ;;  %v1357_v52 = vadd.f32 %v798_v35, %v779_v41  ;;  %v834_v30 = vrot.slane %v1402_v15, %v1275_v39 }
 0x3d3   : > { %v1359_v53 = vadd.f32 %v799_v36, %v780_v42 }
 0x3d5   : > { %719 = vrot.lane.b32.xlu0 %v577_v17, %s1182_s21  ;;  %949 = vrot.lane.b32.xlu1 %v578_v19, %s1183_s22 }
 0x3d9   : > { %806 = vrot.lane.b32.xlu0 %v577_v17, %s1176_s16 }
 0x3dd   : > { %853 = vrot.lane.b32.xlu0 %v577_v17, %s1184_s23 }
 0x3e1   : > { %900 = vrot.lane.b32.xlu0 %v577_v17, %s1181_s20 }
 0x3e5   : > { %581 = vrot.lane.b32.xlu0 %v578_v19, %s1179_s18  ;;  %s994_s18 = sld [smem:[#allocation2]] }
 0x3e9   : > { %627 = vrot.lane.b32.xlu0 %v578_v19, %s1180_s19 }
 0x3eb   : > { %v995_v13 = vstv %s994_s18 }
 0x3ed   : > { %674 = vrot.lane.b32.xlu0 %v578_v19, %s1178_s17 }
 0x3f1   : > { %721 = vrot.lane.b32.xlu0 %v578_v19, %s1182_s21  ;;  %s279_s21 = scalar_lea.vmem %s1524_s7, %s1114_s6 }
 0x3f5   : > { %808 = vrot.lane.b32.xlu0 %v578_v19, %s1176_s16 }
 0x3f9   : > { %855 = vrot.lane.b32.xlu0 %v578_v19, %s1184_s23  ;;  %v747_v19 = vrot.slane %v1099_v3, %v1275_v39 }
 0x3fd   : > { %947 = vrot.lane.b32.xlu0 %v577_v17, %s1183_s22 }
 0x43f   : > { %v580_v20 = vpop.permute.xlu0 %579  ;;  %v673_v28 = vpop.permute.xlu1 %672 }
 0x443   : > { %v1294_v21 = vpop.permute.xlu0 %625 }
 0x447   : > { %v1299_v23 = vpop.permute.xlu0 %719 }
 0x44b   : > { %v1306_v27 = vpop.permute.xlu0 %806 }
 0x44f   : > { %v1311_v14 = vpop.permute.xlu0 %853 }
 0x453   : > { %v1325_v37 = vpop.permute.xlu0 %900 }
 0x457   : > { %v582_v57 = vpop.permute.xlu0 %581 }
 0x458   : > { %v584_v59 = vsel %vm583_vm6, %v580_v20, %v582_v57  ;;  %v585_v60 = vsel %vm583_vm6, %v582_v57, %v580_v20  ;;  %v751_v20 = vrot.slane %v1099_v3, %v1297_v22  ;;  %v870_v57 = vrot.slane %v1407_v16, %v1297_v22 }
 0x459   : > { %v613_v8 = vmul.f32 %v606_v55, %v585_v60  ;;  %v614_v9 = vmul.f32 %v610_v56, %v584_v59  ;;  %v598_v55 = vmul.f32 %v591_v49, %v585_v60  ;;  %v599_v56 = vmul.f32 %v595_v54, %v584_v59 }
 0x45b   : > { %v628_v10 = vpop.permute.xlu0 %627  ;;  %v617_v35 = vrot.slane %v613_v8, 1  ;;  %v618_v36 = vrot.slane %v614_v9, 1 }
 0x45c   : > { %v630_v17 = vsel %vm629_vm7, %v1294_v21, %v628_v10  ;;  %v631_v18 = vsel %vm629_vm7, %v628_v10, %v1294_v21  ;;  %v838_v21 = vrot.slane %v1402_v15, %v1297_v22  ;;  %v903_v15 = vpop.permute.xlu1 %902 }
 0x45d   : > { %v660_v24 = vmul.f32 %v653_v0, %v631_v18  ;;  %v661_v25 = vmul.f32 %v657_v1, %v630_v17  ;;  %v645_v42 = vmul.f32 %v638_v61, %v631_v18  ;;  %v646_v46 = vmul.f32 %v642_v62, %v630_v17 }
 0x45e   : > { %v621_v1 = vadd.f32 %v617_v35, %v598_v55  ;;  %v622_v3 = vadd.f32 %v618_v36, %v599_v56 }
 0x45f   : > { %v664_v38 = vrot.slane %v660_v24, 1  ;;  %v665_v40 = vrot.slane %v661_v25, 1  ;;  %v675_v41 = vpop.permute.xlu0 %674 }
 0x460   : > { %v677_v50 = vsel %vm676_vm8, %v673_v28, %v675_v41  ;;  %v678_v51 = vsel %vm676_vm8, %v675_v41, %v673_v28 }
 0x461   : > { %v668_v63 = vadd.f32 %v664_v38, %v645_v42  ;;  %v669_v0 = vadd.f32 %v665_v40, %v646_v46  ;;  %v707_v61 = vmul.f32 %v700_v5, %v678_v51  ;;  %v708_v62 = vmul.f32 %v704_v6, %v677_v50 }
 0x462   : > { %v692_v8 = vmul.f32 %v685_v2, %v678_v51  ;;  %v693_v9 = vmul.f32 %v689_v4, %v677_v50  ;;  %v905_v5 = vsel %vm904_vm9, %v1325_v37, %v903_v15  ;;  %v906_v2 = vsel %vm904_vm9, %v903_v15, %v1325_v37 }
 0x463   : > { %v722_v10 = vpop.permute.xlu0 %721  ;;  %v711_v49 = vrot.slane %v707_v61, 1  ;;  %v712_v54 = vrot.slane %v708_v62, 1  ;;  %v670_v17 = vadd.f32 %v668_v63, %v621_v1  ;;  %v671_v18 = vadd.f32 %v669_v0, %v622_v3 }
 0x464   : > { %v724_v59 = vsel %vm723_vm10, %v1299_v23, %v722_v10  ;;  %v725_v60 = vsel %vm723_vm10, %v722_v10, %v1299_v23  ;;  %v885_v37 = vrot.slane %v1431_v32, %v1297_v22  ;;  %v935_v42 = vmul.f32 %v928_v45, %v905_v5 }
 0x465   : > { %v754_v4 = vmul.f32 %v747_v19, %v725_v60  ;;  %v755_v6 = vmul.f32 %v751_v20, %v724_v59  ;;  %v715_v24 = vadd.f32 %v711_v49, %v692_v8  ;;  %v716_v25 = vadd.f32 %v712_v54, %v693_v9  ;;  %v950_v54 = vpop.permute.xlu1 %949 }
 0x466   : > { %v739_v28 = vmul.f32 %v732_v11, %v725_v60  ;;  %v740_v35 = vmul.f32 %v736_v12, %v724_v59  ;;  %v936_v46 = vmul.f32 %v932_v47, %v906_v2  ;;  %v939_v9 = vrot.slane %v935_v42, 1 }
 0x467   : > { %v758_v36 = vrot.slane %v754_v4, 1  ;;  %v759_v38 = vrot.slane %v755_v6, 1  ;;  %v809_v40 = vpop.permute.xlu0 %808  ;;  %v717_v19 = vadd.f32 %v715_v24, %v670_v17  ;;  %v718_v20 = vadd.f32 %v716_v25, %v671_v18 }
 0x468   : > { %v811_v23 = vsel %vm810_vm11, %v1306_v27, %v809_v40  ;;  %v812_v41 = vsel %vm810_vm11, %v809_v40, %v1306_v27  ;;  %v1108_v27 = vld [vmem:[%s1522_s5 + $0x10] ss:$8 sm:$0x3]  ;;  %v940_v10 = vrot.slane %v936_v46, 1  ;;  %v921_v4 = vmul.f32 %v917_v44, %v906_v2 }
 0x469   : > { %v762_v11 = vadd.f32 %v758_v36, %v739_v28  ;;  %v763_v12 = vadd.f32 %v759_v38, %v740_v35  ;;  %v841_v50 = vmul.f32 %v834_v30, %v811_v23  ;;  %v842_v51 = vmul.f32 %v838_v21, %v812_v41  ;;  %v1109_v30 = vld [vmem:[%s1522_s5 + $0x21] ss:$8 sm:$0x3] }
 0x46a   : > { %v826_v56 = vmul.f32 %v819_v26, %v811_v23  ;;  %v827_v63 = vmul.f32 %v823_v29, %v812_v41  ;;  %v960_v26 = vrot.slane %v1108_v27, %v1275_v39  ;;  %v964_v29 = vrot.slane %v1108_v27, %v1297_v22 }
 0x46b   : > { %v764_v32 = vadd.f32 %v762_v11, %v717_v19  ;;  %v765_v55 = vadd.f32 %v763_v12, %v718_v20  ;;  %v856_v0 = vpop.permute.xlu0 %855  ;;  %v845_v61 = vrot.slane %v841_v50, 1  ;;  %v846_v45 = vrot.slane %v842_v51, 1 }
 0x46c   : > { %v858_v34 = vsel %vm857_vm12, %v1311_v14, %v856_v0  ;;  %v859_v47 = vsel %vm857_vm12, %v856_v0, %v1311_v14  ;;  %v975_v14 = vrot.slane %v1109_v30, %v1275_v39  ;;  %v979_v15 = vrot.slane %v1109_v30, %v1297_v22 }
 0x46d   : > { %v804_v21 = vadd.f32 %v1357_v52, %v764_v32  ;;  %v805_v7 = vadd.f32 %v1359_v53, %v765_v55  ;;  %v849_v62 = vadd.f32 %v845_v61, %v826_v56  ;;  %v850_v1 = vadd.f32 %v846_v45, %v827_v63 }
 0x46e   : > { %v888_v3 = vmul.f32 %v881_v58, %v858_v34  ;;  %v889_v8 = vmul.f32 %v885_v37, %v859_v47  ;;  %v873_v52 = vmul.f32 %v866_v31, %v858_v34  ;;  %v874_v53 = vmul.f32 %v870_v57, %v859_v47 }
 0x46f   : > { %v948_v49 = vpop.permute.xlu0 %947  ;;  %v920_v58 = vmul.f32 %v913_v43, %v905_v5  ;;  %v851_v17 = vadd.f32 %v849_v62, %v804_v21  ;;  %v852_v16 = vadd.f32 %v850_v1, %v805_v7  ;;  %v944_v35 = vadd.f32 %v940_v10, %v921_v4 }
 0x470   : > { %v892_v59 = vrot.slane %v888_v3, 1  ;;  %v893_v60 = vrot.slane %v889_v8, 1  ;;  %v952_v6 = vsel %vm951_vm13, %v948_v49, %v950_v54  ;;  %v953_v31 = vsel %vm951_vm13, %v950_v54, %v948_v49 }
 0x471   : > { %v982_v24 = vmul.f32 %v975_v14, %v952_v6  ;;  %v983_v25 = vmul.f32 %v979_v15, %v953_v31  ;;  %v943_v28 = vadd.f32 %v939_v9, %v920_v58  ;;  %v967_v5 = vmul.f32 %v960_v26, %v952_v6 }
 0x472   : > { %v896_v57 = vadd.f32 %v892_v59, %v873_v52  ;;  %v897_v18 = vadd.f32 %v893_v60, %v874_v53  ;;  %v968_v38 = vmul.f32 %v964_v29, %v953_v31 }
 0x473   : > { %v986_v22 = vrot.slane %v982_v24, 1  ;;  %v987_v33 = vrot.slane %v983_v25, 1 }
 0x474   : > { %v898_v36 = vadd.f32 %v896_v57, %v851_v17  ;;  %v899_v43 = vadd.f32 %v897_v18, %v852_v16 }
 0x475   : > { %v990_v40 = vadd.f32 %v986_v22, %v967_v5  ;;  %v991_v23 = vadd.f32 %v987_v33, %v968_v38 }
 0x476   : > { %v945_v44 = vadd.f32 %v943_v28, %v898_v36  ;;  %v946_v2 = vadd.f32 %v944_v35, %v899_v43 }
 0x478   : > { %v992_v41 = vadd.f32 %v990_v40, %v945_v44  ;;  %v993_v37 = vadd.f32 %v991_v23, %v946_v2 }
 0x47a   : > { %v996_v19 = vadd.f32 %v995_v13, %v992_v41  ;;  %v997_v20 = vadd.f32 %v995_v13, %v993_v37 }
 0x47c   : > { %v1110_v11 = vmul.f32 -1.442695, %v996_v19  ;;  %v1111_v12 = vmul.f32 -1.442695, %v997_v20 }
 0x47e   : > { %1157 = vpow2.f32 %v1110_v11 }
 0x47f   : > { %1159 = vpow2.f32 %v1111_v12 }
 0x48b   : > { %v1158_v42 = vpop.eup %1157 }
 0x48c   : > { %v1160_v46 = vpop.eup %1159  ;;  %v1004_v50 = vadd.f32 1.0, %v1158_v42 }
 0x48d   : > { %v1005_v51 = vadd.f32 1.0, %v1160_v46 }
 0x48e   : > { %1161 = vrcp.f32 %v1004_v50 }
 0x48f   : > { %1163 = vrcp.f32 %v1005_v51 }
 0x49b   : > { %v1162_v27 = vpop.eup %1161 }
 0x49c   : > { %v1164_v32 = vpop.eup %1163  ;;  %v1013_v55 = vrot.slane %v1162_v27, %v1275_v39 }
 0x49d   : > { %v1017_v56 = vrot.slane %v1164_v32, %v1275_v39 }
 0x49f   : > { %v1020_v63 = vcombine.low %v1013_v55, %v1017_v56 }
 0x4a1   : > { %v1022_v0 = vmul.f32 %v1020_v63, %v1280_v48 }
 0x4a3   : > { %1023 = vst [vmem:[%s279_s21] sm:$0xff] %v1022_v0 }
 0x4a4 PF: > { %s18_s26 = sadd.s32 1, %s1171_s26  }
 0x4a5   : > { %p15_p4 = scmp.ge.s32.totalorder %s18_s26, 4  }
 0x4a7   :  { %17 = sbr.rel (!%p15_p4) target bundleno = 2 (0x2), region = 95 }

</bundles_post_ra>
